<compile_context>
chip_gen: v6e
topology: v6e:2x2x1
jax: 0.10.0
libtpu: 0.0.40
codegen_flags: <defaults>
</compile_context>

<pallas_src>
import functools

import jax
import jax.numpy as jnp
from jax.experimental import pallas as pl
from jax.experimental.pallas import tpu as pltpu


# ---------------------------------------------------------------------------
# Pallas kernel: fused fc1 -> ReLU -> fc2 on one row tile
# ---------------------------------------------------------------------------
def _mlp_kernel(x_ref, w1_ref, w2_ref, o_ref):
    # x_ref : (TM, IN)      row tile of flattened tokens
    # w1_ref: (IN, HID)     fc1 weight (already transposed to x @ W layout)
    # w2_ref: (HID, OUT)    fc2 weight (already transposed to x @ W layout)
    # o_ref : (TM, OUT)
    h = jnp.dot(x_ref[...], w1_ref[...], preferred_element_type=jnp.float32)
    h = jnp.maximum(h, 0.0)                       # ReLU (VPU)
    y = jnp.dot(h.astype(w2_ref.dtype), w2_ref[...],
                preferred_element_type=jnp.float32)
    o_ref[...] = y.astype(o_ref.dtype)


# ---------------------------------------------------------------------------
# Wrapper: flatten leading dims, tile rows, pallas_call
# ---------------------------------------------------------------------------
def mlp_forward(x, params, *, tile_m=128):
    w1 = params["w1"]                 # (IN, HID)
    w2 = params["w2"]                 # (HID, OUT)
    in_features = w1.shape[0]
    hid_features = w1.shape[1]
    out_features = w2.shape[1]
    assert x.shape[-1] == in_features

    lead_shape = x.shape[:-1]
    m = 1
    for d in lead_shape:
        m *= d
    x2 = x.reshape(m, in_features)

    # Pad rows up to a multiple of the tile so the block shape divides evenly.
    tm = min(tile_m, max(8, m))
    m_pad = pl.cdiv(m, tm) * tm
    if m_pad != m:
        x2 = jnp.pad(x2, ((0, m_pad - m), (0, 0)))

    grid = (m_pad // tm,)

    out = pl.pallas_call(
        _mlp_kernel,
        out_shape=jax.ShapeDtypeStruct((m_pad, out_features), x.dtype),
        grid_spec=pltpu.PrefetchScalarGridSpec(
            num_scalar_prefetch=0,
            grid=grid,
            in_specs=[
                pl.BlockSpec((tm, in_features), lambda i: (i, 0)),        # x tile
                pl.BlockSpec((in_features, hid_features), lambda i: (0, 0)),  # W1
                pl.BlockSpec((hid_features, out_features), lambda i: (0, 0)),  # W2
            ],
            out_specs=pl.BlockSpec((tm, out_features), lambda i: (i, 0)),
        ),
        compiler_params=pltpu.CompilerParams(
            dimension_semantics=("parallel",)),
    )(x2, w1, w2)

    if m_pad != m:
        out = out[:m]
    return out.reshape(*lead_shape, out_features)


# ---------------------------------------------------------------------------
# Parameter construction (deterministic, synthetic)
# ---------------------------------------------------------------------------
def make_params(key, in_features, hidden_features, out_features):
    k1, k2 = jax.random.split(key)
    # PyTorch nn.Linear(in, hid, bias=False) stores weight as (hid, in) and
    # computes x @ W.T; we store the transposed (in, hid) layout directly,
    # which is mathematically identical.
    w1 = jax.random.normal(k1, (in_features, hidden_features), jnp.float32) * 0.02
    w2 = jax.random.normal(k2, (hidden_features, out_features), jnp.float32) * 0.02
    return dict(w1=w1, w2=w2)


# ---------------------------------------------------------------------------
# Pure-JAX reference (same math, no Pallas) for a correctness check
# ---------------------------------------------------------------------------
def reference_forward(x, params):
    h = jnp.maximum(x @ params["w1"], 0.0)
    return h @ params["w2"]


if __name__ == "__main__":
    # Small, MXU/lane-friendly configuration:
    #   batch=2, seq=128, in_features=128, hidden=256, out=128
    B, S = 2, 128
    IN, HID, OUT = 128, 256, 128

    key = jax.random.PRNGKey(0)
    kx, kp = jax.random.split(key)
    x = jax.random.normal(kx, (B, S, IN), jnp.float32)
    params = make_params(kp, IN, HID, OUT)

    y = mlp_forward(x, params)
    y = jax.block_until_ready(y)

    y_ref = reference_forward(x, params)
    y_ref = jax.block_until_ready(y_ref)

    assert y.shape == (B, S, OUT), y.shape
    err = float(jnp.max(jnp.abs(y - y_ref)))
    assert jnp.allclose(y, y_ref, atol=1e-3, rtol=1e-3), err
    print("KERNEL_OK")
</pallas_src>

<mosaic_0001>
module attributes {stable_mosaic.version = 11 : i64} {
  func.func @_mlp_kernel(%arg0: i32, %arg1: memref<128x128xf32, #tpu.memory_space<vmem>>, %arg2: memref<128x256xf32, #tpu.memory_space<vmem>>, %arg3: memref<256x128xf32, #tpu.memory_space<vmem>>, %arg4: memref<128x128xf32, #tpu.memory_space<vmem>>) attributes {dimension_semantics = [#tpu.dimension_semantics<parallel>], iteration_bounds = array<i64: 2>, scalar_prefetch = 0 : i64, scratch_operands = 0 : i64, tpu.core_type = #tpu.core_type<tc>, window_params = [{transform_indices = @transform_0, window_bounds = array<i64: 128, 128>}, {pipeline_mode = #tpu.pipeline_mode<synchronous>, transform_indices = @transform_1, window_bounds = array<i64: 128, 256>}, {pipeline_mode = #tpu.pipeline_mode<synchronous>, transform_indices = @transform_2, window_bounds = array<i64: 256, 128>}, {transform_indices = @transform_3, window_bounds = array<i64: 128, 128>}]} {
    %c0 = arith.constant 0 : index
    %c0_0 = arith.constant 0 : index
    %0 = vector.load %arg1[%c0, %c0_0] : memref<128x128xf32, #tpu.memory_space<vmem>>, vector<128x128xf32>
    %c0_1 = arith.constant 0 : index
    %c0_2 = arith.constant 0 : index
    %1 = vector.load %arg2[%c0_1, %c0_2] : memref<128x256xf32, #tpu.memory_space<vmem>>, vector<128x256xf32>
    %cst = arith.constant dense<0.000000e+00> : vector<128x256xf32>
    %2 = tpu.matmul %0, %1, %cst {dimension_numbers = #tpu.dot_dimension_numbers<[1], [0], [0], [1], [0, 0, 1, 1], [], []>} : vector<128x128xf32>, vector<128x256xf32>, vector<128x256xf32> -> vector<128x256xf32>
    %cst_3 = arith.constant 0.000000e+00 : f32
    %3 = vector.broadcast %cst_3 : f32 to vector<128x256xf32>
    %4 = arith.maximumf %2, %3 : vector<128x256xf32>
    %c0_4 = arith.constant 0 : index
    %c0_5 = arith.constant 0 : index
    %5 = vector.load %arg3[%c0_4, %c0_5] : memref<256x128xf32, #tpu.memory_space<vmem>>, vector<256x128xf32>
    %cst_6 = arith.constant dense<0.000000e+00> : vector<128x128xf32>
    %6 = tpu.matmul %4, %5, %cst_6 {dimension_numbers = #tpu.dot_dimension_numbers<[1], [0], [0], [1], [0, 0, 1, 1], [], []>} : vector<128x256xf32>, vector<256x128xf32>, vector<128x128xf32> -> vector<128x128xf32>
    %c0_7 = arith.constant 0 : index
    %c0_8 = arith.constant 0 : index
    %7 = vector.load %arg4[%c0_7, %c0_8] : memref<128x128xf32, #tpu.memory_space<vmem>>, vector<128x128xf32>
    tpu.vector_store %arg4[%c0_7, %c0_8], %6 {strides = array<i32>} : memref<128x128xf32, #tpu.memory_space<vmem>>, vector<128x128xf32>,
    return
  }
  func.func @transform_0(%arg0: i32) -> (i32, i32) {
    %c0_i32 = arith.constant 0 : i32
    %c0_i32_0 = arith.constant 0 : i32
    return %arg0, %c0_i32 : i32, i32
  }
  func.func @transform_1(%arg0: i32) -> (i32, i32) {
    %c0_i32 = arith.constant 0 : i32
    %c0_i32_0 = arith.constant 0 : i32
    %c0_i32_1 = arith.constant 0 : i32
    return %c0_i32, %c0_i32_0 : i32, i32
  }
  func.func @transform_2(%arg0: i32) -> (i32, i32) {
    %c0_i32 = arith.constant 0 : i32
    %c0_i32_0 = arith.constant 0 : i32
    %c0_i32_1 = arith.constant 0 : i32
    return %c0_i32, %c0_i32_0 : i32, i32
  }
  func.func @transform_3(%arg0: i32) -> (i32, i32) {
    %c0_i32 = arith.constant 0 : i32
    %c0_i32_0 = arith.constant 0 : i32
    return %arg0, %c0_i32 : i32, i32
  }
}

</mosaic_0001>

<bundles_post_ra>
// kernel: tpu_custom_call.1
= control target key start
LH: loop header
LB: loop body
LE: loop exit
PB: predicated region body
PF: predicated region fallthrough
CT: control target
= control target key end

     0   :  { %8 = vsyncpa [#allocation3], 0  ;;  %s1366_s0 = inlined_call_operand.hbm [shape: f32[256,128], index: 0, kind: input, shape index: {}]   ;;  %s1367_s1 = inlined_call_operand.hbm [shape: f32[128,256], index: 1, kind: input, shape index: {}]   ;;  %s1368_s2 = inlined_call_operand.hbm [shape: f32[256,128], index: 2, kind: input, shape index: {}]   ;;  %s1369_s3 = inlined_call_operand.hbm [shape: f32[256,128], index: 3, kind: output, shape index: {}]  }
   0x1   :  { %10 = vsyncpa [#allocation3 + $0x1], 0 }
   0x2   :  { %11 = vsyncpa [#allocation6], 0 }
   0x3   :  { %12 = vsyncpa [#allocation4], 0 }
   0x4   :  { %14 = vsyncpa [#allocation4 + $0x1], 0  ;;  %s1115_s12 = smov 0   ;;  %s1117_s13 = smov 0  }
   0x5   :  { %s1119_s14 = smov 0   ;;  %s1121_s15 = smov 0  }
   0x6 LB: > { %s1136_s16 = sadd.s32 4294967295, %s1082_s15   ;;  %s760_s17 = sadd.s32 4294967294, %s1082_s15   ;;  %s1082_s15 = sphi %s1121_s15, %s1391_s15   ;;  %s1078_s14 = sphi %s1119_s14, %s1390_s14   ;;  %s1074_s13 = sphi %s1117_s13, %s1389_s13   ;;  %s1070_s12 = sphi %s1115_s12, %s1388_s12  }
   0x7   : > { %p40_p0 = scmp.ne.s32.totalorder %s1074_s13, %s1070_s12  ;;  %p1370_p1 = scmp.eq.s32.totalorder %s1136_s16, 0 }
   0x8   : > { %p112_p3 = scmp.eq.s32.totalorder %s760_s17, 1  ;;  %p761_p5 = scmp.ge.s32.totalorder %s1082_s15, 1 }
   0x9   : > { %p1145_p4 = por %p1370_p1, %p40_p0  ;;  %p119_p7 = scmp.lt.s32.totalorder %s1082_s15, 3 }
   0xa   : > { %p1150_p6 = por %p112_p3, %p40_p0  ;;  %s1084_s21 = smov [#allocation5]  }
   0xb   : > { %s1374_s18 = scalar_select %p1145_p4, 1, 0 }
   0xc   : > { %s1375_s19 = scalar_select %p1150_p6, 1, 0 }
   0xd   : > { %p1155_p8 = pnand %p761_p5, %p119_p7  ;;  %s131_s22 = sshll.u32 %s1084_s21, 4  ;;  %s132_s22 = int_to_ptr.vmem [resolvable:$true] %s131_s22 }
   0xe   : > { %s1085_s24 = smov [#allocation7]   ;;  %s945_s26 = scalar_lea.vmem %s132_s22, 4096 }
   0xf   : > { %s1376_s20 = scalar_select %p1155_p8, 1, 0 }
  0x10   : > { %p872_p9 = pneg %p1155_p8  ;;  %s144_s25 = sshll.u32 %s1085_s24, 4  ;;  %s145_s25 = int_to_ptr.vmem [resolvable:$true] %s144_s25 }
  0x11   : > { %p946_p13 = scmp.ne.s32.totalorder %s132_s22, %s945_s26  ;;  %p953_p5 = scmp.lt.s32.totalorder %s132_s22, %s132_s22 }
  0x12   : > { %p1164_p11 = pnand %p872_p9, %p1370_p1  ;;  %p954_p7 = scmp.lt.s32.totalorder %s945_s26, %s945_s26 }
  0x14   : > { %p936_p12 = pneg %p1164_p11  ;;  %p955_p10 = por %p954_p7, %p953_p5 }
  0x16   : > { %p948_p0 = pnand %p946_p13, %p936_p12 }
  0x18   : > { %p949_p3 = pneg %p948_p0 }
  0x1a   : > { %p956_p9 = pnand %p955_p10, %p949_p3 }
  0x1c   : > { %959 = shalt.err (!%p956_p9)
}
  0x1d   : > { %s1086_s27 = smov 256   ;;  %s1087_s28 = smov 16  }
  0x1e   : > { %875 = dma.hbm_to_vmem [thread:$0]  (!%p1164_p11), %s1367_s1, 4096, %s132_s22, [#allocation6], %s1086_s27, %s1086_s27, %s1087_s28  }
  0x1f   : > { %s971_s4 = scalar_lea.vmem %s145_s25, 4096  ;;  %p979_p2 = scmp.lt.s32.totalorder %s145_s25, %s145_s25 }
  0x20   : > { %p972_p1 = scmp.ne.s32.totalorder %s145_s25, %s971_s4  ;;  %p980_p6 = scmp.lt.s32.totalorder %s971_s4, %s971_s4 }
  0x22   : > { %p974_p13 = pnand %p972_p1, %p936_p12  ;;  %p981_p5 = por %p980_p6, %p979_p2 }
  0x24   : > { %p975_p0 = pneg %p974_p13 }
  0x26   : > { %p982_p10 = pnand %p981_p5, %p975_p0 }
  0x28   : > { %985 = shalt.err (!%p982_p10)
}
  0x29   : > { %s1088_s5 = smov 128   ;;  %s1089_s6 = smov 8  }
  0x2a   : > { %878 = dma.hbm_to_vmem [thread:$0]  (!%p1164_p11), %s1368_s2, 4096, %s145_s25, [#allocation6], %s1088_s5, %s1088_s5, %s1089_s6  }
  0x2b   : > { %s1190_s9 = sadd.s32 1, %s1082_s15   ;;  %s27_s11 = sadd.s32 1, %s1078_s14 }
  0x2c   : > { %s24_s10 = ssub.s32 %s1082_s15, %s1190_s9  ;;  %p34_p2 = scmp.ne.s32.totalorder %s1078_s14, %s1074_s13 }
  0x2d   : > { %p25_p1 = scmp.eq.s32.totalorder %s24_s10, 0  ;;  %p35_p6 = scmp.eq.s32.totalorder %s1082_s15, 0 }
  0x2e   : > { %p1378_p3 = scmp.eq.s32.totalorder %s1136_s16, 1  ;;  %p889_p9 = scmp.lt.s32.totalorder %s1082_s15, 2 }
  0x2f   : > { %s1199_s17 = scalar_select %p25_p1, %s1078_s14, %s27_s11  }
  0x30   : > { %p36_p12 = por %p35_p6, %p34_p2  ;;  %p1203_p7 = por %p1378_p3, %p34_p2 }
  0x31   : > { %s158_s22 = sand.u32 1, %s1078_s14   ;;  %s778_s24 = sshll.u32 %s1082_s15, 11 }
  0x32   : > { %s1379_s21 = scalar_select %p1203_p7, 1, 0 }
  0x33   : > { %s765_s23 = sshll.u32 %s158_s22, 7  ;;  %s1213_s27 = scalar_lea.hbm %s1366_s0, %s778_s24 }
  0x34   : > { %s162_s28 = scalar_lea.vmem [#allocation2], %s765_s23  ;;  %p1217_p11 = pnand %p889_p9, %p36_p12 }
  0x35   : > { %s169_s29 = sshll.u32 %s162_s28, 4  ;;  %s1221_s4 = scalar_lea.sflag [#allocation3], %s158_s22  ;;  %s1215_s29 = int_to_ptr.vmem [resolvable:$true] %s169_s29 }
  0x36   : > { %s986_s7 = scalar_lea.hbm %s1213_s27, 2048  ;;  %p988_p0 = pneg %p1217_p11 }
  0x37   : > { %p987_p13 = scmp.ne.s32.totalorder %s1213_s27, %s986_s7  ;;  %s991_s11 = scalar_lea.hbm %s1366_s0, 4096 }
  0x38   : > { %p992_p1 = scmp.lt.s32.totalorder %s1213_s27, %s1366_s0  ;;  %p993_p2 = scmp.lt.s32.totalorder %s991_s11, %s986_s7 }
  0x39   : > { %p989_p5 = pnand %p988_p0, %p987_p13 }
  0x3a   : > { %p994_p6 = por %p993_p2, %p992_p1 }
  0x3b   : > { %p990_p10 = pneg %p989_p5 }
  0x3d   : > { %p995_p12 = pnand %p994_p6, %p990_p10 }
  0x3f   : > { %998 = shalt.err (!%p995_p12)
}
  0x40   : > { %s999_s22 = scalar_lea.vmem %s1215_s29, 2048  ;;  %s1090_s25 = smov [#allocation2]  }
  0x41   : > { %p1000_p3 = scmp.ne.s32.totalorder %s1215_s29, %s999_s22  ;;  %s1004_s26 = sshll.u32 %s1090_s25, 4  ;;  %s1005_s26 = int_to_ptr.vmem [resolvable:$false] %s1004_s26 }
  0x42   : > { %s1006_s28 = scalar_lea.vmem %s1005_s26, 4096  ;;  %p1007_p5 = scmp.lt.s32.totalorder %s1215_s29, %s1005_s26 }
  0x43   : > { %p1002_p9 = pnand %p1000_p3, %p988_p0  ;;  %p1008_p7 = scmp.lt.s32.totalorder %s1006_s28, %s999_s22 }
  0x45   : > { %p1003_p13 = pneg %p1002_p9  ;;  %p1009_p4 = por %p1008_p7, %p1007_p5 }
  0x47   : > { %p1010_p8 = pnand %p1009_p4, %p1003_p13 }
  0x49   : > { %1013 = shalt.err (!%p1010_p8)
}
  0x4a   : > { %882 = dma.hbm_to_vmem [thread:$0]  (!%p1217_p11), %s1213_s27, 2048, %s1215_s29, %s1221_s4, %s1088_s5, %s1088_s5, %s1089_s6  }
  0x4b   : > { %p1381_p0 = scmp.ne.s32.totalorder %s1376_s20, 0 }
  0x4c   : > { %s1248_s7 = sand.u32 (!%p1381_p0), 1, %s1074_s13   ;;  %p1382_p4 = scmp.ne.s32.totalorder (!%p1381_p0), %s1374_s18, 0 }
  0x4d   : > { %181 = sbr.rel (%p1381_p0) target bundleno = 588 (0x24c), region = 32  ;;  %s769_s8 = sshll.u32 (!%p1381_p0), %s1248_s7, 7 }
  0x4e   : > { %s184_s10 = scalar_lea.sflag (!%p1381_p0), [#allocation3], %s1248_s7  ;;  %s1254_s30 = scalar_lea.vmem (!%p1381_p0), [#allocation2], %s769_s8 }
  0x52   : > { %1057 = dma.done.wait (%p1382_p4), %s184_s10, 2048  }
  0x53   : > { %1059 = vsyncadd (%p1382_p4), %s184_s10, 4294965248  ;;  %p1383_p8 = scmp.eq.s32.totalorder %s1136_s16, 0 }
  0x55   : > { %1061 = dma.done.wait (%p1383_p8), [#allocation6], 8192   ;;  %p1384_p7 = pmov %p1383_p8 }
  0x56   : > { %v1091_v0 = vmov 0.0   ;;  %v267_v1 = vld [vmem:[#allocation5 + $0xf8] sm:$0xff]  ;;  %v266_v2 = vld [vmem:[#allocation5 + $0xf0] sm:$0xff]  ;;  %v265_v3 = vld [vmem:[#allocation5 + $0xe8] sm:$0xff]  ;;  %s1298_s18 = scalar_lea.vmem [#allocation8], %s769_s8  ;;  %s779_s20 = sshll.u32 %s1136_s16, 11 }
  0x57   : > { %1063 = vsyncadd (%p1384_p7), [#allocation6], 4294959104  ;;  %332 = vmatprep.mubr.f32.mxu0 %v1091_v0  ;;  %268 = vmatprep.subr.mxu0 %v267_v1  ;;  %v264_v4 = vld [vmem:[#allocation5 + $0xe0] sm:$0xff]  ;;  %v263_v5 = vld [vmem:[#allocation5 + $0xd8] sm:$0xff]  ;;  %s668_s5 = sshll.u32 %s1298_s18, 4  ;;  %s1320_s29 = scalar_lea.hbm %s1369_s3, %s779_s20  ;;  %s1322_s5 = int_to_ptr.vmem [resolvable:$true] %s668_s5 }
  0x58   : > { %269 = vmatpush1.msra.mxu0 %v266_v2  ;;  %v262_v6 = vld [vmem:[#allocation5 + $0xd0] sm:$0xff]  ;;  %v261_v7 = vld [vmem:[#allocation5 + $0xc8] sm:$0xff]  ;;  %v260_v8 = vld [vmem:[#allocation5 + $0xc0] sm:$0xff]  ;;  %s655_s4 = scalar_lea.sflag [#allocation4], %s1248_s7  ;;  %s1014_s11 = scalar_lea.vmem %s1322_s5, 2048 }
  0x59   : > { %270 = vmatprep.subr.mxu0 %v265_v3  ;;  %v259_v9 = vld [vmem:[#allocation5 + $0xb8] sm:$0xff]  ;;  %v258_v10 = vld [vmem:[#allocation5 + $0xb0] sm:$0xff]  ;;  %v257_v11 = vld [vmem:[#allocation5 + $0xa8] sm:$0xff]  ;;  %p1015_p11 = scmp.ne.s32.totalorder %s1322_s5, %s1014_s11  ;;  %p1385_p10 = scmp.ne.s32.totalorder %s1379_s21, 0 }
  0x5a   : > { %271 = vmatpush1.msra.mxu0 %v264_v4  ;;  %v256_v12 = vld [vmem:[#allocation5 + $0xa0] sm:$0xff]  ;;  %v255_v13 = vld [vmem:[#allocation5 + $0x98] sm:$0xff]  ;;  %v254_v14 = vld [vmem:[#allocation5 + $0x90] sm:$0xff]  ;;  %s1092_s16 = smov [#allocation8]  }
  0x5b   : > { %272 = vmatprep.subr.mxu0 %v263_v5  ;;  %v253_v15 = vld [vmem:[#allocation5 + $0x88] sm:$0xff]  ;;  %v252_v16 = vld [vmem:[#allocation5 + $0x80] sm:$0xff]  ;;  %v251_v17 = vld [vmem:[#allocation5 + $0x78] sm:$0xff]  ;;  %p1016_p1 = pnand %p1015_p11, %p1385_p10  ;;  %s1018_s23 = sshll.u32 %s1092_s16, 4  ;;  %s1019_s23 = int_to_ptr.vmem [resolvable:$false] %s1018_s23 }
  0x5c   : > { %273 = vmatpush1.msra.mxu0 %v262_v6  ;;  %v250_v18 = vld [vmem:[#allocation5 + $0x70] sm:$0xff]  ;;  %v249_v19 = vld [vmem:[#allocation5 + $0x68] sm:$0xff]  ;;  %v492_v20 = vld [vmem:[#allocation7 + $0xf8] sm:$0xff]  ;;  %s1020_s24 = scalar_lea.vmem %s1019_s23, 4096  ;;  %p1021_p6 = scmp.lt.s32.totalorder %s1322_s5, %s1019_s23 }
  0x5d   : > { %274 = vmatprep.subr.mxu0 %v261_v7  ;;  %v476_v21 = vld [vmem:[#allocation7 + $0x78] sm:$0xff]  ;;  %v491_v22 = vld [vmem:[#allocation7 + $0xf0] sm:$0xff]  ;;  %v248_v23 = vld [vmem:[#allocation5 + $0x60] sm:$0xff]  ;;  %780 = vmatprep.subr.mxu1 %v492_v20  ;;  %p1017_p2 = pneg %p1016_p1  ;;  %p1022_p12 = scmp.lt.s32.totalorder %s1020_s24, %s1014_s11 }
  0x5e   : > { %275 = vmatpush1.msra.mxu0 %v260_v8  ;;  %v475_v24 = vld [vmem:[#allocation7 + $0x70] sm:$0xff]  ;;  %v247_v25 = vld [vmem:[#allocation5 + $0x58] sm:$0xff]  ;;  %781 = vmatpush3.msra.mxu1 %v476_v21  ;;  %v490_v26 = vld [vmem:[#allocation7 + $0xe8] sm:$0xff] }
  0x5f   : > { %276 = vmatprep.subr.mxu0 %v259_v9  ;;  %v246_v27 = vld [vmem:[#allocation5 + $0x50] sm:$0xff]  ;;  %782 = vmatprep.subr.mxu1 %v491_v22  ;;  %v474_v28 = vld [vmem:[#allocation7 + $0x68] sm:$0xff]  ;;  %v489_v30 = vld [vmem:[#allocation7 + $0xe0] sm:$0xff]  ;;  %p1023_p3 = por %p1022_p12, %p1021_p6 }
  0x60   : > { %277 = vmatpush1.msra.mxu0 %v258_v10  ;;  %v245_v29 = vld [vmem:[#allocation5 + $0x48] sm:$0xff]  ;;  %783 = vmatpush3.msra.mxu1 %v475_v24  ;;  %v244_v31 = vld [vmem:[#allocation5 + $0x40] sm:$0xff]  ;;  %v243_v33 = vld [vmem:[#allocation5 + $0x38] sm:$0xff] }
  0x61   : > { %278 = vmatprep.subr.mxu0 %v257_v11  ;;  %784 = vmatprep.subr.mxu1 %v490_v26  ;;  %v473_v32 = vld [vmem:[#allocation7 + $0x60] sm:$0xff]  ;;  %v488_v34 = vld [vmem:[#allocation7 + $0xd8] sm:$0xff]  ;;  %v242_v35 = vld [vmem:[#allocation5 + $0x30] sm:$0xff]  ;;  %p1024_p9 = pnand %p1023_p3, %p1017_p2 }
  0x62   : > { %279 = vmatpush1.msra.mxu0 %v256_v12  ;;  %785 = vmatpush3.msra.mxu1 %v474_v28  ;;  %v472_v36 = vld [vmem:[#allocation7 + $0x58] sm:$0xff]  ;;  %v241_v37 = vld [vmem:[#allocation5 + $0x28] sm:$0xff]  ;;  %v487_v38 = vld [vmem:[#allocation7 + $0xd0] sm:$0xff] }
  0x63   : > { %280 = vmatprep.subr.mxu0 %v255_v13  ;;  %786 = vmatprep.subr.mxu1 %v489_v30  ;;  %v240_v39 = vld [vmem:[#allocation5 + $0x20] sm:$0xff]  ;;  %v471_v40 = vld [vmem:[#allocation7 + $0x50] sm:$0xff]  ;;  %v239_v41 = vld [vmem:[#allocation5 + $0x18] sm:$0xff] }
  0x64   : > { %281 = vmatpush1.msra.mxu0 %v254_v14  ;;  %787 = vmatpush3.msra.mxu1 %v473_v32  ;;  %v486_v42 = vld [vmem:[#allocation7 + $0xc8] sm:$0xff]  ;;  %v238_v43 = vld [vmem:[#allocation5 + $0x10] sm:$0xff]  ;;  %v485_v46 = vld [vmem:[#allocation7 + $0xc0] sm:$0xff] }
  0x65   : > { %282 = vmatprep.subr.mxu0 %v253_v15  ;;  %788 = vmatprep.subr.mxu1 %v488_v34  ;;  %v470_v44 = vld [vmem:[#allocation7 + $0x48] sm:$0xff]  ;;  %v236_v47 = vld [vmem:[#allocation5] sm:$0xff]  ;;  %v484_v50 = vld [vmem:[#allocation7 + $0xb8] sm:$0xff] }
  0x66   : > { %283 = vmatpush1.msra.mxu0 %v252_v16  ;;  %789 = vmatpush3.msra.mxu1 %v472_v36  ;;  %v237_v45 = vld [vmem:[#allocation5 + $0x8] sm:$0xff]  ;;  %v469_v48 = vld [vmem:[#allocation7 + $0x40] sm:$0xff]  ;;  %v468_v51 = vld [vmem:[#allocation7 + $0x38] sm:$0xff] }
  0x67   : > { %284 = vmatprep.subr.mxu0 %v251_v17  ;;  %790 = vmatprep.subr.mxu1 %v487_v38  ;;  %v220_v49 = vld [vmem:[%s1254_s30] sm:$0xff]  ;;  %v483_v52 = vld [vmem:[#allocation7 + $0xb0] sm:$0xff]  ;;  %v221_v54 = vld [vmem:[%s1254_s30 + $0x8] sm:$0xff] }
  0x68   : > { %285 = vmatpush1.msra.mxu0 %v250_v18  ;;  %791 = vmatpush3.msra.mxu1 %v471_v40  ;;  %v467_v53 = vld [vmem:[#allocation7 + $0x30] sm:$0xff]  ;;  %v482_v55 = vld [vmem:[#allocation7 + $0xa8] sm:$0xff]  ;;  %v481_v57 = vld [vmem:[#allocation7 + $0xa0] sm:$0xff] }
  0x69   : > { %286 = vmatprep.subr.mxu0 %v249_v19  ;;  %792 = vmatprep.subr.mxu1 %v486_v42  ;;  %v466_v56 = vld [vmem:[#allocation7 + $0x28] sm:$0xff]  ;;  %v465_v58 = vld [vmem:[#allocation7 + $0x20] sm:$0xff]  ;;  %v222_v59 = vld [vmem:[%s1254_s30 + $0x10] sm:$0xff] }
  0x6a   : > { %287 = vmatpush1.msra.mxu0 %v248_v23  ;;  %793 = vmatpush3.msra.mxu1 %v470_v44  ;;  %v480_v60 = vld [vmem:[#allocation7 + $0x98] sm:$0xff]  ;;  %v224_v63 = vld [vmem:[%s1254_s30 + $0x20] sm:$0xff]  ;;  %v225_v1 = vld [vmem:[%s1254_s30 + $0x28] sm:$0xff] }
  0x6b   : > { %288 = vmatprep.subr.mxu0 %v247_v25  ;;  %794 = vmatprep.subr.mxu1 %v485_v46  ;;  %v464_v61 = vld [vmem:[#allocation7 + $0x18] sm:$0xff]  ;;  %v226_v2 = vld [vmem:[%s1254_s30 + $0x30] sm:$0xff]  ;;  %v228_v4 = vld [vmem:[%s1254_s30 + $0x40] sm:$0xff] }
  0x6c   : > { %289 = vmatpush1.msra.mxu0 %v246_v27  ;;  %795 = vmatpush3.msra.mxu1 %v469_v48  ;;  %v223_v62 = vld [vmem:[%s1254_s30 + $0x18] sm:$0xff]  ;;  %v229_v5 = vld [vmem:[%s1254_s30 + $0x48] sm:$0xff]  ;;  %v230_v6 = vld [vmem:[%s1254_s30 + $0x50] sm:$0xff] }
  0x6d   : > { %290 = vmatprep.subr.mxu0 %v245_v29  ;;  %796 = vmatprep.subr.mxu1 %v484_v50  ;;  %v227_v3 = vld [vmem:[%s1254_s30 + $0x38] sm:$0xff]  ;;  %v232_v8 = vld [vmem:[%s1254_s30 + $0x60] sm:$0xff]  ;;  %v233_v9 = vld [vmem:[%s1254_s30 + $0x68] sm:$0xff] }
  0x6e   : > { %291 = vmatpush1.msra.mxu0 %v244_v31  ;;  %797 = vmatpush3.msra.mxu1 %v468_v51  ;;  %v231_v7 = vld [vmem:[%s1254_s30 + $0x58] sm:$0xff]  ;;  %v234_v10 = vld [vmem:[%s1254_s30 + $0x70] sm:$0xff]  ;;  %v478_v14 = vld [vmem:[#allocation7 + $0x88] sm:$0xff] }
  0x6f   : > { %292 = vmatprep.subr.mxu0 %v243_v33  ;;  %798 = vmatprep.subr.mxu1 %v483_v52  ;;  %v235_v11 = vld [vmem:[%s1254_s30 + $0x78] sm:$0xff]  ;;  %v479_v12 = vld [vmem:[#allocation7 + $0x90] sm:$0xff]  ;;  %v462_v15 = vld [vmem:[#allocation7 + $0x8] sm:$0xff] }
  0x70   : > { %293 = vmatpush1.msra.mxu0 %v242_v35  ;;  %799 = vmatpush3.msra.mxu1 %v467_v53  ;;  %v463_v13 = vld [vmem:[#allocation7 + $0x10] sm:$0xff]  ;;  %v477_v16 = vld [vmem:[#allocation7 + $0x80] sm:$0xff] }
  0x71   : > { %294 = vmatprep.subr.mxu0 %v241_v37  ;;  %800 = vmatprep.subr.mxu1 %v482_v55  ;;  %v461_v17 = vld [vmem:[#allocation7] sm:$0xff] }
  0x72   : > { %295 = vmatpush1.msra.mxu0 %v240_v39  ;;  %801 = vmatpush3.msra.mxu1 %v466_v56 }
  0x73   : > { %296 = vmatprep.subr.mxu0 %v239_v41  ;;  %802 = vmatprep.subr.mxu1 %v481_v57 }
  0x74   : > { %297 = vmatpush1.msra.mxu0 %v238_v43  ;;  %803 = vmatpush3.msra.mxu1 %v465_v58 }
  0x75   : > { %298 = vmatprep.subr.mxu0 %v237_v45  ;;  %804 = vmatprep.subr.mxu1 %v480_v60 }
  0x76   : > { %299 = vmatpush1.msra.mxu0 %v236_v47  ;;  %805 = vmatpush3.msra.mxu1 %v464_v61 }
  0x77   : > { %333 = vmatmul.mubr.f32.vlgmr.msra.gmra.mxu0 %v220_v49  ;;  %806 = vmatprep.subr.mxu1 %v479_v12 }
  0x78   : > { %338 = vmatprep.mubr.f32.mxu0 %v1091_v0  ;;  %807 = vmatpush3.msra.mxu1 %v463_v13 }
  0x79   : > { %808 = vmatprep.subr.mxu1 %v478_v14 }
  0x7a   : > { %809 = vmatpush3.msra.mxu1 %v462_v15 }
  0x7b   : > { %339 = vmatmul.mubr.f32.gmra.mxu0 %v221_v54  ;;  %810 = vmatprep.subr.mxu1 %v477_v16 }
  0x7c   : > { %344 = vmatprep.mubr.f32.mxu0 %v1091_v0  ;;  %811 = vmatpush3.msra.mxu1 %v461_v17 }
  0x7f   : > { %345 = vmatmul.mubr.f32.gmra.mxu0 %v222_v59 }
  0x80   : > { %350 = vmatprep.mubr.f32.mxu0 %v1091_v0 }
  0x83   : > { %351 = vmatmul.mubr.f32.gmra.mxu0 %v223_v62 }
  0x84   : > { %356 = vmatprep.mubr.f32.mxu0 %v1091_v0 }
  0x87   : > { %357 = vmatmul.mubr.f32.gmra.mxu0 %v224_v63 }
  0x88   : > { %362 = vmatprep.mubr.f32.mxu0 %v1091_v0 }
  0x8b   : > { %363 = vmatmul.mubr.f32.gmra.mxu0 %v225_v1 }
  0x8c   : > { %368 = vmatprep.mubr.f32.mxu0 %v1091_v0 }
  0x8f   : > { %369 = vmatmul.mubr.f32.gmra.mxu0 %v226_v2 }
  0x90   : > { %374 = vmatprep.mubr.f32.mxu0 %v1091_v0 }
  0x93   : > { %375 = vmatmul.mubr.f32.gmra.mxu0 %v227_v3 }
  0x94   : > { %380 = vmatprep.mubr.f32.mxu0 %v1091_v0 }
  0x97   : > { %381 = vmatmul.mubr.f32.gmra.mxu0 %v228_v4 }
  0x98   : > { %386 = vmatprep.mubr.f32.mxu0 %v1091_v0 }
  0x9b   : > { %387 = vmatmul.mubr.f32.gmra.mxu0 %v229_v5 }
  0x9c   : > { %392 = vmatprep.mubr.f32.mxu0 %v1091_v0 }
  0x9f   : > { %393 = vmatmul.mubr.f32.gmra.mxu0 %v230_v6 }
  0xa0   : > { %398 = vmatprep.mubr.f32.mxu0 %v1091_v0 }
  0xa3   : > { %399 = vmatmul.mubr.f32.gmra.mxu0 %v231_v7 }
  0xa4   : > { %404 = vmatprep.mubr.f32.mxu0 %v1091_v0 }
  0xa7   : > { %405 = vmatmul.mubr.f32.gmra.mxu0 %v232_v8 }
  0xa8   : > { %410 = vmatprep.mubr.f32.mxu0 %v1091_v0 }
  0xab   : > { %411 = vmatmul.mubr.f32.gmra.mxu0 %v233_v9 }
  0xac   : > { %416 = vmatprep.mubr.f32.mxu0 %v1091_v0 }
  0xaf   : > { %417 = vmatmul.mubr.f32.gmra.mxu0 %v234_v10 }
  0xb0   : > { %422 = vmatprep.mubr.f32.mxu0 %v1091_v0 }
  0xb3   : > { %423 = vmatmul.mubr.f32.gmra.mxu0 %v235_v11 }
 0x137   : > { %v334_v18 = vpop.f32.mrf.mxu0 }
 0x138   : > { %v429_v21 = vmax.f32 %v334_v18, 0.0 }
 0x139   : > { %v336_v19 = vpop.f32.mrf.mxu0 }
 0x13a   : > { %v430_v20 = vmax.f32 %v336_v19, 0.0 }
 0x13b   : > { %v340_v22 = vpop.f32.mrf.mxu0 }
 0x13c   : > { %557 = vmatprep.mubr.f32.mxu1 %v430_v20  ;;  %v431_v24 = vmax.f32 %v340_v22, 0.0 }
 0x13d   : > { %v342_v0 = vpop.f32.mrf.mxu0  ;;  %558 = vmatmul.mubr.f32.vlgmr.msra.gmra.mxu1 %v429_v21 }
 0x13e   : > { %v432_v23 = vmax.f32 %v342_v0, 0.0 }
 0x13f   : > { %v346_v25 = vpop.f32.mrf.mxu0 }
 0x140   : > { %562 = vmatprep.mubr.f32.mxu1 %v432_v23  ;;  %v433_v28 = vmax.f32 %v346_v25, 0.0 }
 0x141   : > { %v348_v26 = vpop.f32.mrf.mxu0  ;;  %563 = vmatmul.mubr.f32.gmra.mxu1 %v431_v24 }
 0x142   : > { %v434_v27 = vmax.f32 %v348_v26, 0.0 }
 0x143   : > { %v352_v29 = vpop.f32.mrf.mxu0 }
 0x144   : > { %567 = vmatprep.mubr.f32.mxu1 %v434_v27  ;;  %v435_v32 = vmax.f32 %v352_v29, 0.0 }
 0x145   : > { %v354_v30 = vpop.f32.mrf.mxu0  ;;  %568 = vmatmul.mubr.f32.gmra.mxu1 %v433_v28 }
 0x146   : > { %v436_v31 = vmax.f32 %v354_v30, 0.0 }
 0x147   : > { %v358_v33 = vpop.f32.mrf.mxu0 }
 0x148   : > { %572 = vmatprep.mubr.f32.mxu1 %v436_v31  ;;  %v437_v36 = vmax.f32 %v358_v33, 0.0 }
 0x149   : > { %v360_v34 = vpop.f32.mrf.mxu0  ;;  %573 = vmatmul.mubr.f32.gmra.mxu1 %v435_v32 }
 0x14a   : > { %v438_v35 = vmax.f32 %v360_v34, 0.0 }
 0x14b   : > { %v364_v37 = vpop.f32.mrf.mxu0 }
 0x14c   : > { %577 = vmatprep.mubr.f32.mxu1 %v438_v35  ;;  %v439_v40 = vmax.f32 %v364_v37, 0.0 }
 0x14d   : > { %v366_v38 = vpop.f32.mrf.mxu0  ;;  %578 = vmatmul.mubr.f32.gmra.mxu1 %v437_v36 }
 0x14e   : > { %v440_v39 = vmax.f32 %v366_v38, 0.0 }
 0x14f   : > { %v370_v41 = vpop.f32.mrf.mxu0 }
 0x150   : > { %582 = vmatprep.mubr.f32.mxu1 %v440_v39  ;;  %v441_v44 = vmax.f32 %v370_v41, 0.0 }
 0x151   : > { %v372_v42 = vpop.f32.mrf.mxu0  ;;  %583 = vmatmul.mubr.f32.gmra.mxu1 %v439_v40 }
 0x152   : > { %v442_v43 = vmax.f32 %v372_v42, 0.0 }
 0x153   : > { %v376_v45 = vpop.f32.mrf.mxu0 }
 0x154   : > { %587 = vmatprep.mubr.f32.mxu1 %v442_v43  ;;  %v443_v48 = vmax.f32 %v376_v45, 0.0 }
 0x155   : > { %v378_v46 = vpop.f32.mrf.mxu0  ;;  %588 = vmatmul.mubr.f32.gmra.mxu1 %v441_v44 }
 0x156   : > { %v444_v47 = vmax.f32 %v378_v46, 0.0 }
 0x157   : > { %v382_v49 = vpop.f32.mrf.mxu0 }
 0x158   : > { %592 = vmatprep.mubr.f32.mxu1 %v444_v47  ;;  %v445_v52 = vmax.f32 %v382_v49, 0.0 }
 0x159   : > { %v384_v50 = vpop.f32.mrf.mxu0  ;;  %593 = vmatmul.mubr.f32.gmra.mxu1 %v443_v48 }
 0x15a   : > { %v446_v51 = vmax.f32 %v384_v50, 0.0 }
 0x15b   : > { %v388_v53 = vpop.f32.mrf.mxu0 }
 0x15c   : > { %597 = vmatprep.mubr.f32.mxu1 %v446_v51  ;;  %v447_v56 = vmax.f32 %v388_v53, 0.0 }
 0x15d   : > { %v390_v54 = vpop.f32.mrf.mxu0  ;;  %598 = vmatmul.mubr.f32.gmra.mxu1 %v445_v52 }
 0x15e   : > { %v448_v55 = vmax.f32 %v390_v54, 0.0 }
 0x15f   : > { %v394_v57 = vpop.f32.mrf.mxu0 }
 0x160   : > { %602 = vmatprep.mubr.f32.mxu1 %v448_v55  ;;  %v449_v60 = vmax.f32 %v394_v57, 0.0 }
 0x161   : > { %v396_v58 = vpop.f32.mrf.mxu0  ;;  %603 = vmatmul.mubr.f32.gmra.mxu1 %v447_v56 }
 0x162   : > { %v450_v59 = vmax.f32 %v396_v58, 0.0 }
 0x163   : > { %v400_v61 = vpop.f32.mrf.mxu0 }
 0x164   : > { %607 = vmatprep.mubr.f32.mxu1 %v450_v59  ;;  %v451_v1 = vmax.f32 %v400_v61, 0.0 }
 0x165   : > { %v402_v62 = vpop.f32.mrf.mxu0  ;;  %608 = vmatmul.mubr.f32.gmra.mxu1 %v449_v60 }
 0x166   : > { %v452_v63 = vmax.f32 %v402_v62, 0.0 }
 0x167   : > { %v406_v2 = vpop.f32.mrf.mxu0 }
 0x168   : > { %612 = vmatprep.mubr.f32.mxu1 %v452_v63  ;;  %v453_v5 = vmax.f32 %v406_v2, 0.0 }
 0x169   : > { %v408_v3 = vpop.f32.mrf.mxu0  ;;  %613 = vmatmul.mubr.f32.gmra.mxu1 %v451_v1 }
 0x16a   : > { %v454_v4 = vmax.f32 %v408_v3, 0.0 }
 0x16b   : > { %v412_v6 = vpop.f32.mrf.mxu0 }
 0x16c   : > { %617 = vmatprep.mubr.f32.mxu1 %v454_v4  ;;  %v455_v9 = vmax.f32 %v412_v6, 0.0 }
 0x16d   : > { %v414_v7 = vpop.f32.mrf.mxu0  ;;  %618 = vmatmul.mubr.f32.gmra.mxu1 %v453_v5 }
 0x16e   : > { %v456_v8 = vmax.f32 %v414_v7, 0.0 }
 0x16f   : > { %v418_v10 = vpop.f32.mrf.mxu0 }
 0x170   : > { %622 = vmatprep.mubr.f32.mxu1 %v456_v8  ;;  %v457_v13 = vmax.f32 %v418_v10, 0.0 }
 0x171   : > { %v420_v11 = vpop.f32.mrf.mxu0  ;;  %623 = vmatmul.mubr.f32.gmra.mxu1 %v455_v9 }
 0x172   : > { %v458_v12 = vmax.f32 %v420_v11, 0.0 }
 0x173   : > { %v424_v14 = vpop.f32.mrf.mxu0 }
 0x174   : > { %627 = vmatprep.mubr.f32.mxu1 %v458_v12  ;;  %v459_v17 = vmax.f32 %v424_v14, 0.0 }
 0x175   : > { %v426_v15 = vpop.f32.mrf.mxu0  ;;  %628 = vmatmul.mubr.f32.gmra.mxu1 %v457_v13 }
 0x176   : > { %v460_v16 = vmax.f32 %v426_v15, 0.0 }
 0x178   : > { %632 = vmatprep.mubr.f32.mxu1 %v460_v16 }
 0x179   : > { %633 = vmatmul.mubr.f32.gmra.mxu1 %v459_v17 }
 0x1fd   : > { %v812_v18 = vpop.f32.mrf.mxu1 }
 0x1ff   : > { %v813_v19 = vpop.f32.mrf.mxu1 }
 0x200   : > { %v814_v20 = vadd.f32 %v813_v19, %v812_v18 }
 0x201   : > { %v815_v21 = vpop.f32.mrf.mxu1 }
 0x202   : > { %638 = vst [vmem:[%s1298_s18] sm:$0xff] %v814_v20 }
 0x203   : > { %v816_v22 = vpop.f32.mrf.mxu1 }
 0x204   : > { %v817_v0 = vadd.f32 %v816_v22, %v815_v21 }
 0x205   : > { %v818_v23 = vpop.f32.mrf.mxu1 }
 0x206   : > { %639 = vst [vmem:[%s1298_s18 + $0x8] sm:$0xff] %v817_v0 }
 0x207   : > { %v819_v24 = vpop.f32.mrf.mxu1 }
 0x208   : > { %v820_v25 = vadd.f32 %v819_v24, %v818_v23 }
 0x209   : > { %v821_v26 = vpop.f32.mrf.mxu1 }
 0x20a   : > { %640 = vst [vmem:[%s1298_s18 + $0x10] sm:$0xff] %v820_v25 }
 0x20b   : > { %v822_v27 = vpop.f32.mrf.mxu1 }
 0x20c   : > { %v823_v28 = vadd.f32 %v822_v27, %v821_v26 }
 0x20d   : > { %v824_v29 = vpop.f32.mrf.mxu1 }
 0x20e   : > { %641 = vst [vmem:[%s1298_s18 + $0x18] sm:$0xff] %v823_v28 }
 0x20f   : > { %v825_v30 = vpop.f32.mrf.mxu1 }
 0x210   : > { %v826_v31 = vadd.f32 %v825_v30, %v824_v29 }
 0x211   : > { %v827_v32 = vpop.f32.mrf.mxu1 }
 0x212   : > { %642 = vst [vmem:[%s1298_s18 + $0x20] sm:$0xff] %v826_v31 }
 0x213   : > { %v828_v33 = vpop.f32.mrf.mxu1 }
 0x214   : > { %v829_v34 = vadd.f32 %v828_v33, %v827_v32 }
 0x215   : > { %v830_v35 = vpop.f32.mrf.mxu1 }
 0x216   : > { %643 = vst [vmem:[%s1298_s18 + $0x28] sm:$0xff] %v829_v34 }
 0x217   : > { %v831_v36 = vpop.f32.mrf.mxu1 }
 0x218   : > { %v832_v37 = vadd.f32 %v831_v36, %v830_v35 }
 0x219   : > { %v833_v38 = vpop.f32.mrf.mxu1 }
 0x21a   : > { %644 = vst [vmem:[%s1298_s18 + $0x30] sm:$0xff] %v832_v37 }
 0x21b   : > { %v834_v39 = vpop.f32.mrf.mxu1 }
 0x21c   : > { %v835_v40 = vadd.f32 %v834_v39, %v833_v38 }
 0x21d   : > { %v836_v41 = vpop.f32.mrf.mxu1 }
 0x21e   : > { %645 = vst [vmem:[%s1298_s18 + $0x38] sm:$0xff] %v835_v40 }
 0x21f   : > { %v837_v42 = vpop.f32.mrf.mxu1 }
 0x220   : > { %v838_v43 = vadd.f32 %v837_v42, %v836_v41 }
 0x221   : > { %v839_v44 = vpop.f32.mrf.mxu1 }
 0x222   : > { %646 = vst [vmem:[%s1298_s18 + $0x40] sm:$0xff] %v838_v43 }
 0x223   : > { %v840_v45 = vpop.f32.mrf.mxu1 }
 0x224   : > { %v841_v46 = vadd.f32 %v840_v45, %v839_v44 }
 0x225   : > { %v842_v47 = vpop.f32.mrf.mxu1 }
 0x226   : > { %647 = vst [vmem:[%s1298_s18 + $0x48] sm:$0xff] %v841_v46 }
 0x227   : > { %v843_v48 = vpop.f32.mrf.mxu1 }
 0x228   : > { %v844_v49 = vadd.f32 %v843_v48, %v842_v47 }
 0x229   : > { %v845_v50 = vpop.f32.mrf.mxu1 }
 0x22a   : > { %648 = vst [vmem:[%s1298_s18 + $0x50] sm:$0xff] %v844_v49 }
 0x22b   : > { %v846_v51 = vpop.f32.mrf.mxu1 }
 0x22c   : > { %v847_v52 = vadd.f32 %v846_v51, %v845_v50 }
 0x22d   : > { %v848_v53 = vpop.f32.mrf.mxu1 }
 0x22e   : > { %649 = vst [vmem:[%s1298_s18 + $0x58] sm:$0xff] %v847_v52 }
 0x22f   : > { %v849_v54 = vpop.f32.mrf.mxu1 }
 0x230   : > { %v850_v55 = vadd.f32 %v849_v54, %v848_v53 }
 0x231   : > { %v851_v56 = vpop.f32.mrf.mxu1 }
 0x232   : > { %650 = vst [vmem:[%s1298_s18 + $0x60] sm:$0xff] %v850_v55 }
 0x233   : > { %v852_v57 = vpop.f32.mrf.mxu1 }
 0x234   : > { %v853_v58 = vadd.f32 %v852_v57, %v851_v56 }
 0x235   : > { %v854_v59 = vpop.f32.mrf.mxu1 }
 0x236   : > { %651 = vst [vmem:[%s1298_s18 + $0x68] sm:$0xff] %v853_v58 }
 0x237   : > { %v855_v60 = vpop.f32.mrf.mxu1 }
 0x238   : > { %v856_v61 = vadd.f32 %v855_v60, %v854_v59 }
 0x239   : > { %v857_v62 = vpop.f32.mrf.mxu1 }
 0x23a   : > { %652 = vst [vmem:[%s1298_s18 + $0x70] sm:$0xff] %v856_v61 }
 0x23b   : > { %v858_v63 = vpop.f32.mrf.mxu1 }
 0x23c   : > { %v859_v1 = vadd.f32 %v858_v63, %v857_v62 }
 0x23e   : > { %653 = vst [vmem:[%s1298_s18 + $0x78] sm:$0xff] %v859_v1 }
 0x23f   : > { %1027 = shalt.err (!%p1024_p9)
}
 0x240   : > { %s1028_s22 = scalar_lea.hbm %s1320_s29, 2048  ;;  %s1032_s28 = scalar_lea.hbm %s1369_s3, 4096 }
 0x241   : > { %p1029_p13 = scmp.ne.s32.totalorder %s1320_s29, %s1028_s22  ;;  %p1033_p4 = scmp.lt.s32.totalorder %s1320_s29, %s1369_s3 }
 0x242   : > { %p1034_p8 = scmp.lt.s32.totalorder %s1032_s28, %s1028_s22 }
 0x243   : > { %p1030_p5 = pnand %p1029_p13, %p1385_p10 }
 0x244   : > { %p1035_p7 = por %p1034_p8, %p1033_p4 }
 0x245   : > { %p1031_p0 = pneg %p1030_p5 }
 0x247   : > { %p1036_p11 = pnand %p1035_p7, %p1031_p0 }
 0x249   : > { %1039 = shalt.err (!%p1036_p11)
}
 0x24a   : > { %s1093_s30 = smov 128   ;;  %s1094_s18 = smov 8  }
 0x24b   : > { %870 = dma.vmem_to_hbm [thread:$0]  (%p1385_p10), %s1322_s5, 2048, %s1320_s29, %s655_s4, %s1093_s30, %s1093_s30, %s1094_s18  }
 0x24c PF: > { %s683_s20 = sand.u32 1, %s1070_s12   ;;  %p1386_p1 = scmp.ne.s32.totalorder %s1375_s19, 0 }
 0x24d   : > { %p1387_p2 = scmp.ge.s32.totalorder %s1082_s15, 2  ;;  %s684_s6 = scalar_lea.sflag [#allocation4], %s683_s20 }
 0x24f   : > { %p884_p6 = pnand %p1387_p2, %p1386_p1 }
 0x251   : > { %p885_p12 = pneg %p884_p6 }
 0x253   : > { %1065 = dma.done.wait (%p885_p12), %s684_s6, 2048  }
 0x254   : > { %1067 = vsyncadd (%p885_p12), %s684_s6, 4294965248  ;;  %p17_p3 = scmp.ge.s32.totalorder %s1190_s9, 4   ;;  %s1388_s12 = smov %s1074_s13 }
 0x255   : > { %s1389_s13 = smov %s1078_s14  ;;  %s1390_s14 = smov %s1199_s17 }
 0x256   : > { %s1391_s15 = smov %s1190_s9  ;;  %19 = sbr.rel (!%p17_p3) target bundleno = 6 (0x6), region = 85 }
 0x25b   :  { %689 = vsyncpa [#allocation3], 1 }
 0x25c   :  { %691 = vsyncpa [#allocation3 + $0x1], 1 }
 0x25d   :  { %692 = vsyncpa [#allocation6], 1 }
 0x25e   :  { %693 = vsyncpa [#allocation4], 1 }
 0x25f   :  { %695 = vsyncpa [#allocation4 + $0x1], 1 }

</bundles_post_ra>
